<compile_context>
chip_gen: v6e
topology: v6e:2x2x1
jax: 0.10.0
libtpu: 0.0.40
codegen_flags: <defaults>
</compile_context>

<pallas_src>
import functools

import jax
import jax.numpy as jnp
from jax import lax
from jax.experimental import pallas as pl
from jax.experimental.pallas import tpu as pltpu

MARGIN = 0.2


def _choose_tile(batch, max_tile=256):
    """Largest 8-aligned tile <= max_tile that divides the batch size."""
    if batch <= max_tile:
        return batch
    for t in (256, 128, 64, 32, 16, 8):
        if t <= max_tile and batch % t == 0:
            return t
    return batch  # fall back: whole batch as a single block


def _make_kernel(batch, margin):
    batch_f = float(batch)
    inv_n_off = 1.0 / float(batch * (batch - 1))

    def kernel(zx_r_ref, zy_r_ref, zx_c_ref, zy_c_ref, out_ref, acc_ref):
        i = pl.program_id(0)
        j = pl.program_id(1)
        ni = pl.num_programs(0)
        nj = pl.num_programs(1)

        @pl.when(jnp.logical_and(i == 0, j == 0))
        def _init():
            acc_ref[0] = 0.0   # sum of relu(sim_xy - pos_row + sim_xx_neg)
            acc_ref[1] = 0.0   # sum of relu(sim_xy - pos_col + 0.2)
            acc_ref[2] = 0.0   # sum of sim_xx_neg
            acc_ref[3] = 0.0   # diagonal correction sum(margin*sigmoid(-||zx_i||^2))

        zx_r = zx_r_ref[...]   # (tr, D) rows of z_x
        zy_r = zy_r_ref[...]   # (tr, D) rows of z_y
        zx_c = zx_c_ref[...]   # (tc, D) "column" rows of z_x
        zy_c = zy_c_ref[...]   # (tc, D) "column" rows of z_y

        # Similarity tiles on the MXU (f32 accumulation, native input dtype).
        contract = (((1,), (1,)), ((), ()))
        sim_xy = lax.dot_general(zx_r, zy_c, contract,
                                 preferred_element_type=jnp.float32)  # (tr, tc)
        sim_xx = lax.dot_general(zx_r, zx_c, contract,
                                 preferred_element_type=jnp.float32)  # (tr, tc)

        # Positive similarities (== diag of the full sim_xy), on the VPU.
        zx_r32 = zx_r.astype(jnp.float32)
        zy_r32 = zy_r.astype(jnp.float32)
        zx_c32 = zx_c.astype(jnp.float32)
        zy_c32 = zy_c.astype(jnp.float32)
        pos_row = jnp.sum(zx_r32 * zy_r32, axis=1, keepdims=True)         # (tr, 1)
        pos_col = jnp.sum(zx_c32 * zy_c32, axis=1).reshape(1, -1)          # (1, tc)

        sim_xx_neg = margin * jax.nn.sigmoid(-sim_xx)                      # (tr, tc)

        # Full-tile sums; diagonal contributions removed analytically at
        # finalize time (no iota/mask/select work on the VALU).
        acc_ref[0] += jnp.sum(jnp.maximum(sim_xy - pos_row + sim_xx_neg, 0.0))
        acc_ref[1] += jnp.sum(jnp.maximum(sim_xy - pos_col + 0.2, 0.0))
        acc_ref[2] += jnp.sum(sim_xx_neg)

        # Per-row diagonal correction, accumulated exactly once per row tile.
        @pl.when(j == 0)
        def _diag():
            diag_xx = jnp.sum(zx_r32 * zx_r32, axis=1, keepdims=True)      # (tr, 1)
            acc_ref[3] += jnp.sum(margin * jax.nn.sigmoid(-diag_xx))

        @pl.when(jnp.logical_and(i == ni - 1, j == nj - 1))
        def _finalize():
            diag_corr = acc_ref[3]
            loss_xy_sum = acc_ref[0] - diag_corr          # off-diagonal only
            loss_yx_sum = acc_ref[1] - batch_f * 0.2      # diag of loss_yx is 0.2/row
            sim_xx_neg_sum = acc_ref[2] - diag_corr
            out_ref[0] = (loss_xy_sum + loss_yx_sum) * inv_n_off
            out_ref[1] = sim_xx_neg_sum * inv_n_off

    return kernel


@functools.partial(jax.jit, static_argnames=("margin", "tile"))
def cosine_triplet_loss(z_x, z_y, *, margin=MARGIN, tile=None):
    """Forward of CosineTripletLoss.

    Returns (loss, sim_xx_neg_mean) as device scalars (no host sync), matching
    the PyTorch module's forward numerics.
    """
    assert z_x.shape == z_y.shape and z_x.ndim == 2
    B, D = z_x.shape
    assert B >= 2, "need at least 2 rows for off-diagonal terms"
    if tile is None:
        tile = _choose_tile(B)
    assert B % tile == 0, (B, tile)
    nt = B // tile

    kernel = _make_kernel(B, float(margin))

    row_spec = pl.BlockSpec((tile, D), lambda i, j: (i, 0))
    col_spec = pl.BlockSpec((tile, D), lambda i, j: (j, 0))

    out = pl.pallas_call(
        kernel,
        out_shape=jax.ShapeDtypeStruct((2,), jnp.float32),
        grid_spec=pltpu.PrefetchScalarGridSpec(
            num_scalar_prefetch=0,
            grid=(nt, nt),
            # z_x / z_y are passed twice: once indexed by the row tile, once by
            # the column tile (for sim_xx and the column positive term).
            in_specs=[row_spec, row_spec, col_spec, col_spec],
            out_specs=pl.BlockSpec((2,), lambda i, j: (0,),
                                   memory_space=pltpu.MemorySpace.SMEM),
            scratch_shapes=[pltpu.SMEM((4,), jnp.float32)],
        ),
        compiler_params=pltpu.CompilerParams(
            dimension_semantics=("arbitrary", "arbitrary")),
    )(z_x, z_y, z_x, z_y)
    return out[0], out[1]


def _reference(z_x, z_y, margin=MARGIN):
    """Pure-JAX reference mirroring the PyTorch forward exactly."""
    B = z_x.shape[0]
    hp = lax.Precision.HIGHEST
    sim_xy = jnp.dot(z_x, z_y.T, precision=hp)
    sim_yx = sim_xy.T
    sim_xx = jnp.dot(z_x, z_x.T, precision=hp)
    eye = jnp.eye(B, dtype=bool)
    sim_xx_neg = margin * jax.nn.sigmoid(-sim_xx[~eye].reshape(B, B - 1))
    sim_xy_pos = sim_xy[eye].reshape(B, 1)
    sim_xy_neg = sim_xy[~eye].reshape(B, B - 1)
    loss_xy = jax.nn.relu(sim_xy_neg - sim_xy_pos + sim_xx_neg)
    sim_yx_pos = sim_yx[eye].reshape(B, 1)
    sim_yx_neg = sim_yx[~eye].reshape(B, B - 1)
    loss_yx = jax.nn.relu(sim_yx_neg - sim_yx_pos + 0.2)
    return loss_xy.mean() + loss_yx.mean(), sim_xx_neg.mean()


def _make_inputs(key, B, D):
    kx, ky = jax.random.split(key)
    z_x = jax.random.normal(kx, (B, D), dtype=jnp.float32)
    z_y = jax.random.normal(ky, (B, D), dtype=jnp.float32)
    # the module expects L2-normalized embeddings (done by the caller, not the kernel)
    z_x = z_x / jnp.linalg.norm(z_x, axis=1, keepdims=True)
    z_y = z_y / jnp.linalg.norm(z_y, axis=1, keepdims=True)
    return z_x, z_y


if __name__ == "__main__":
    # Case 1: nominal small shape (batch=8, embedding=32) -> single-tile grid.
    z_x, z_y = _make_inputs(jax.random.PRNGKey(0), 8, 32)
    loss, sim_mean = jax.block_until_ready(cosine_triplet_loss(z_x, z_y))
    ref_loss, ref_mean = _reference(z_x, z_y)
    assert abs(float(loss) - float(ref_loss)) < 2e-5, (float(loss), float(ref_loss))
    assert abs(float(sim_mean) - float(ref_mean)) < 2e-5, (float(sim_mean), float(ref_mean))

    # Case 2: forced tile=8 on batch=32 -> 4x4 grid; exercises cross-step
    # scalar accumulation and the analytic diagonal corrections.
    z_x2, z_y2 = _make_inputs(jax.random.PRNGKey(1), 32, 64)
    loss2, sim_mean2 = jax.block_until_ready(cosine_triplet_loss(z_x2, z_y2, tile=8))
    ref_loss2, ref_mean2 = _reference(z_x2, z_y2)
    assert abs(float(loss2) - float(ref_loss2)) < 2e-5, (float(loss2), float(ref_loss2))
    assert abs(float(sim_mean2) - float(ref_mean2)) < 2e-5, (float(sim_mean2), float(ref_mean2))

    print("KERNEL_OK")
</pallas_src>

<mosaic_0001>
module attributes {stable_mosaic.version = 11 : i64} {
  func.func @kernel(%arg0: i32, %arg1: i32, %arg2: memref<8x32xf32, #tpu.memory_space<vmem>>, %arg3: memref<8x32xf32, #tpu.memory_space<vmem>>, %arg4: memref<8x32xf32, #tpu.memory_space<vmem>>, %arg5: memref<8x32xf32, #tpu.memory_space<vmem>>, %arg6: memref<2xf32, #tpu.memory_space<smem>>, %arg7: memref<4xf32, #tpu.memory_space<smem>>) attributes {dimension_semantics = [#tpu.dimension_semantics<arbitrary>, #tpu.dimension_semantics<arbitrary>], iteration_bounds = array<i64: 1, 1>, scalar_prefetch = 0 : i64, scratch_operands = 1 : i64, tpu.core_type = #tpu.core_type<tc>, window_params = [{transform_indices = @transform_0, window_bounds = array<i64: 8, 32>}, {transform_indices = @transform_1, window_bounds = array<i64: 8, 32>}, {transform_indices = @transform_2, window_bounds = array<i64: 8, 32>}, {transform_indices = @transform_3, window_bounds = array<i64: 8, 32>}, {transform_indices = @transform_4, window_bounds = array<i64: 2>}]} {
    %c0_i32 = arith.constant 0 : i32
    %0 = arith.cmpi eq, %arg0, %c0_i32 : i32
    %c0_i32_0 = arith.constant 0 : i32
    %1 = arith.cmpi eq, %arg1, %c0_i32_0 : i32
    %2 = arith.andi %0, %1 : i1
    %3 = arith.extui %2 : i1 to i32
    %c0_i32_1 = arith.constant 0 : i32
    %4 = arith.cmpi ne, %3, %c0_i32_1 : i32
    scf.if %4 {
      %cst_30 = arith.constant 0.000000e+00 : f32
      %c0_31 = arith.constant 0 : index
      %66 = memref.load %arg7[%c0_31] : memref<4xf32, #tpu.memory_space<smem>>
      memref.store %cst_30, %arg7[%c0_31] : memref<4xf32, #tpu.memory_space<smem>>
      %cst_32 = arith.constant 0.000000e+00 : f32
      %c1_33 = arith.constant 1 : index
      %67 = memref.load %arg7[%c1_33] : memref<4xf32, #tpu.memory_space<smem>>
      memref.store %cst_32, %arg7[%c1_33] : memref<4xf32, #tpu.memory_space<smem>>
      %cst_34 = arith.constant 0.000000e+00 : f32
      %c2_35 = arith.constant 2 : index
      %68 = memref.load %arg7[%c2_35] : memref<4xf32, #tpu.memory_space<smem>>
      memref.store %cst_34, %arg7[%c2_35] : memref<4xf32, #tpu.memory_space<smem>>
      %cst_36 = arith.constant 0.000000e+00 : f32
      %c3 = arith.constant 3 : index
      %69 = memref.load %arg7[%c3] : memref<4xf32, #tpu.memory_space<smem>>
      memref.store %cst_36, %arg7[%c3] : memref<4xf32, #tpu.memory_space<smem>>
    } else {
    }
    %c0 = arith.constant 0 : index
    %c0_2 = arith.constant 0 : index
    %5 = vector.load %arg2[%c0, %c0_2] : memref<8x32xf32, #tpu.memory_space<vmem>>, vector<8x32xf32>
    %c0_3 = arith.constant 0 : index
    %c0_4 = arith.constant 0 : index
    %6 = vector.load %arg3[%c0_3, %c0_4] : memref<8x32xf32, #tpu.memory_space<vmem>>, vector<8x32xf32>
    %c0_5 = arith.constant 0 : index
    %c0_6 = arith.constant 0 : index
    %7 = vector.load %arg4[%c0_5, %c0_6] : memref<8x32xf32, #tpu.memory_space<vmem>>, vector<8x32xf32>
    %c0_7 = arith.constant 0 : index
    %c0_8 = arith.constant 0 : index
    %8 = vector.load %arg5[%c0_7, %c0_8] : memref<8x32xf32, #tpu.memory_space<vmem>>, vector<8x32xf32>
    %cst = arith.constant dense<0.000000e+00> : vector<8x8xf32>
    %9 = tpu.matmul %5, %8, %cst {dimension_numbers = #tpu.dot_dimension_numbers<[1], [1], [0], [0], [0, 0, 1, 0], [], []>} : vector<8x32xf32>, vector<8x32xf32>, vector<8x8xf32> -> vector<8x8xf32>
    %cst_9 = arith.constant dense<0.000000e+00> : vector<8x8xf32>
    %10 = tpu.matmul %5, %7, %cst_9 {dimension_numbers = #tpu.dot_dimension_numbers<[1], [1], [0], [0], [0, 0, 1, 0], [], []>} : vector<8x32xf32>, vector<8x32xf32>, vector<8x8xf32> -> vector<8x8xf32>
    %11 = arith.mulf %5, %6 : vector<8x32xf32>
    %cst_10 = arith.constant dense<0.000000e+00> : vector<8xf32>
    %12 = vector.multi_reduction <add>, %11, %cst_10 [1] : vector<8x32xf32> to vector<8xf32>
    %13 = vector.shape_cast %12 : vector<8xf32> to vector<8x1xf32>
    %14 = arith.mulf %7, %8 : vector<8x32xf32>
    %cst_11 = arith.constant dense<0.000000e+00> : vector<8xf32>
    %15 = vector.multi_reduction <add>, %14, %cst_11 [1] : vector<8x32xf32> to vector<8xf32>
    %16 = vector.shape_cast %15 : vector<8xf32> to vector<1x8xf32>
    %cst_12 = arith.constant 0.000000e+00 : f32
    %17 = vector.broadcast %cst_12 : f32 to vector<8x8xf32>
    %18 = arith.subf %17, %10 : vector<8x8xf32>
    %19 = arith.negf %18 : vector<8x8xf32>
    %20 = math.exp %19 : vector<8x8xf32>
    %cst_13 = arith.constant 1.000000e+00 : f32
    %21 = vector.broadcast %cst_13 : f32 to vector<8x8xf32>
    %22 = arith.addf %21, %20 : vector<8x8xf32>
    %23 = arith.divf %21, %22 : vector<8x8xf32>
    %cst_14 = arith.constant 2.000000e-01 : f32
    %24 = vector.broadcast %cst_14 : f32 to vector<8x8xf32>
    %25 = arith.mulf %24, %23 : vector<8x8xf32>
    %c0_15 = arith.constant 0 : index
    %26 = memref.load %arg7[%c0_15] : memref<4xf32, #tpu.memory_space<smem>>
    %27 = vector.broadcast %13 : vector<8x1xf32> to vector<8x8xf32>
    %28 = arith.subf %9, %27 : vector<8x8xf32>
    %29 = arith.addf %28, %25 : vector<8x8xf32>
    %cst_16 = arith.constant 0.000000e+00 : f32
    %30 = vector.broadcast %cst_16 : f32 to vector<8x8xf32>
    %31 = arith.maximumf %29, %30 : vector<8x8xf32>
    %32 = vector.shape_cast %31 : vector<8x8xf32> to vector<1x8x8xf32>
    %cst_17 = arith.constant dense<0.000000e+00> : vector<1xf32>
    %33 = vector.multi_reduction <add>, %32, %cst_17 [1, 2] : vector<1x8x8xf32> to vector<1xf32>
    %34 = vector.shape_cast %33 : vector<1xf32> to vector<1x1x1xf32>
    %35 = vector.extract %34[0, 0, 0] : f32 from vector<1x1x1xf32>
    %36 = arith.addf %26, %35 : f32
    %c0_18 = arith.constant 0 : index
    %37 = memref.load %arg7[%c0_18] : memref<4xf32, #tpu.memory_space<smem>>
    memref.store %36, %arg7[%c0_18] : memref<4xf32, #tpu.memory_space<smem>>
    %c1 = arith.constant 1 : index
    %38 = memref.load %arg7[%c1] : memref<4xf32, #tpu.memory_space<smem>>
    %39 = vector.broadcast %16 : vector<1x8xf32> to vector<8x8xf32>
    %40 = arith.subf %9, %39 : vector<8x8xf32>
    %cst_19 = arith.constant 2.000000e-01 : f32
    %41 = vector.broadcast %cst_19 : f32 to vector<8x8xf32>
    %42 = arith.addf %40, %41 : vector<8x8xf32>
    %cst_20 = arith.constant 0.000000e+00 : f32
    %43 = vector.broadcast %cst_20 : f32 to vector<8x8xf32>
    %44 = arith.maximumf %42, %43 : vector<8x8xf32>
    %45 = vector.shape_cast %44 : vector<8x8xf32> to vector<1x8x8xf32>
    %cst_21 = arith.constant dense<0.000000e+00> : vector<1xf32>
    %46 = vector.multi_reduction <add>, %45, %cst_21 [1, 2] : vector<1x8x8xf32> to vector<1xf32>
    %47 = vector.shape_cast %46 : vector<1xf32> to vector<1x1x1xf32>
    %48 = vector.extract %47[0, 0, 0] : f32 from vector<1x1x1xf32>
    %49 = arith.addf %38, %48 : f32
    %c1_22 = arith.constant 1 : index
    %50 = memref.load %arg7[%c1_22] : memref<4xf32, #tpu.memory_space<smem>>
    memref.store %49, %arg7[%c1_22] : memref<4xf32, #tpu.memory_space<smem>>
    %c2 = arith.constant 2 : index
    %51 = memref.load %arg7[%c2] : memref<4xf32, #tpu.memory_space<smem>>
    %52 = vector.shape_cast %25 : vector<8x8xf32> to vector<1x8x8xf32>
    %cst_23 = arith.constant dense<0.000000e+00> : vector<1xf32>
    %53 = vector.multi_reduction <add>, %52, %cst_23 [1, 2] : vector<1x8x8xf32> to vector<1xf32>
    %54 = vector.shape_cast %53 : vector<1xf32> to vector<1x1x1xf32>
    %55 = vector.extract %54[0, 0, 0] : f32 from vector<1x1x1xf32>
    %56 = arith.addf %51, %55 : f32
    %c2_24 = arith.constant 2 : index
    %57 = memref.load %arg7[%c2_24] : memref<4xf32, #tpu.memory_space<smem>>
    memref.store %56, %arg7[%c2_24] : memref<4xf32, #tpu.memory_space<smem>>
    %c0_i32_25 = arith.constant 0 : i32
    %58 = arith.cmpi eq, %arg1, %c0_i32_25 : i32
    %59 = arith.extui %58 : i1 to i32
    %c0_i32_26 = arith.constant 0 : i32
    %60 = arith.cmpi ne, %59, %c0_i32_26 : i32
    scf.if %60 {
      %66 = arith.mulf %5, %5 : vector<8x32xf32>
      %cst_30 = arith.constant dense<0.000000e+00> : vector<8xf32>
      %67 = vector.multi_reduction <add>, %66, %cst_30 [1] : vector<8x32xf32> to vector<8xf32>
      %68 = vector.shape_cast %67 : vector<8xf32> to vector<8x1xf32>
      %c3 = arith.constant 3 : index
      %69 = memref.load %arg7[%c3] : memref<4xf32, #tpu.memory_space<smem>>
      %cst_31 = arith.constant 0.000000e+00 : f32
      %70 = vector.broadcast %cst_31 : f32 to vector<8x1xf32>
      %71 = arith.subf %70, %68 : vector<8x1xf32>
      %72 = arith.negf %71 : vector<8x1xf32>
      %73 = math.exp %72 : vector<8x1xf32>
      %cst_32 = arith.constant 1.000000e+00 : f32
      %74 = vector.broadcast %cst_32 : f32 to vector<8x1xf32>
      %75 = arith.addf %74, %73 : vector<8x1xf32>
      %76 = arith.divf %74, %75 : vector<8x1xf32>
      %cst_33 = arith.constant 2.000000e-01 : f32
      %77 = vector.broadcast %cst_33 : f32 to vector<8x1xf32>
      %78 = arith.mulf %77, %76 : vector<8x1xf32>
      %79 = vector.shape_cast %78 : vector<8x1xf32> to vector<1x8x1xf32>
      %cst_34 = arith.constant dense<0.000000e+00> : vector<1xf32>
      %80 = vector.multi_reduction <add>, %79, %cst_34 [1, 2] : vector<1x8x1xf32> to vector<1xf32>
      %81 = vector.shape_cast %80 : vector<1xf32> to vector<1x1x1xf32>
      %82 = vector.extract %81[0, 0, 0] : f32 from vector<1x1x1xf32>
      %83 = arith.addf %69, %82 : f32
      %c3_35 = arith.constant 3 : index
      %84 = memref.load %arg7[%c3_35] : memref<4xf32, #tpu.memory_space<smem>>
      memref.store %83, %arg7[%c3_35] : memref<4xf32, #tpu.memory_space<smem>>
    } else {
    }
    %c0_i32_27 = arith.constant 0 : i32
    %61 = arith.cmpi eq, %arg0, %c0_i32_27 : i32
    %c0_i32_28 = arith.constant 0 : i32
    %62 = arith.cmpi eq, %arg1, %c0_i32_28 : i32
    %63 = arith.andi %61, %62 : i1
    %64 = arith.extui %63 : i1 to i32
    %c0_i32_29 = arith.constant 0 : i32
    %65 = arith.cmpi ne, %64, %c0_i32_29 : i32
    scf.if %65 {
      %c3 = arith.constant 3 : index
      %66 = memref.load %arg7[%c3] : memref<4xf32, #tpu.memory_space<smem>>
      %c0_30 = arith.constant 0 : index
      %67 = memref.load %arg7[%c0_30] : memref<4xf32, #tpu.memory_space<smem>>
      %68 = arith.subf %67, %66 : f32
      %c1_31 = arith.constant 1 : index
      %69 = memref.load %arg7[%c1_31] : memref<4xf32, #tpu.memory_space<smem>>
      %cst_32 = arith.constant 1.600000e+00 : f32
      %70 = arith.subf %69, %cst_32 : f32
      %c2_33 = arith.constant 2 : index
      %71 = memref.load %arg7[%c2_33] : memref<4xf32, #tpu.memory_space<smem>>
      %72 = arith.subf %71, %66 : f32
      %73 = arith.addf %68, %70 : f32
      %cst_34 = arith.constant 0.0178571437 : f32
      %74 = arith.mulf %73, %cst_34 : f32
      %c0_35 = arith.constant 0 : index
      %75 = memref.load %arg6[%c0_35] : memref<2xf32, #tpu.memory_space<smem>>
      memref.store %74, %arg6[%c0_35] : memref<2xf32, #tpu.memory_space<smem>>
      %cst_36 = arith.constant 0.0178571437 : f32
      %76 = arith.mulf %72, %cst_36 : f32
      %c1_37 = arith.constant 1 : index
      %77 = memref.load %arg6[%c1_37] : memref<2xf32, #tpu.memory_space<smem>>
      memref.store %76, %arg6[%c1_37] : memref<2xf32, #tpu.memory_space<smem>>
    } else {
    }
    return
  }
  func.func @transform_0(%arg0: i32, %arg1: i32) -> (i32, i32) {
    %c0_i32 = arith.constant 0 : i32
    %c0_i32_0 = arith.constant 0 : i32
    return %arg0, %c0_i32 : i32, i32
  }
  func.func @transform_1(%arg0: i32, %arg1: i32) -> (i32, i32) {
    %c0_i32 = arith.constant 0 : i32
    %c0_i32_0 = arith.constant 0 : i32
    return %arg0, %c0_i32 : i32, i32
  }
  func.func @transform_2(%arg0: i32, %arg1: i32) -> (i32, i32) {
    %c0_i32 = arith.constant 0 : i32
    %c0_i32_0 = arith.constant 0 : i32
    return %arg1, %c0_i32 : i32, i32
  }
  func.func @transform_3(%arg0: i32, %arg1: i32) -> (i32, i32) {
    %c0_i32 = arith.constant 0 : i32
    %c0_i32_0 = arith.constant 0 : i32
    return %arg1, %c0_i32 : i32, i32
  }
  func.func @transform_4(%arg0: i32, %arg1: i32) -> i32 {
    %c0_i32 = arith.constant 0 : i32
    %c0_i32_0 = arith.constant 0 : i32
    return %c0_i32 : i32
  }
}

</mosaic_0001>

<bundles_post_ra>
// kernel: cosine_triplet_loss.1
= control target key start
LH: loop header
LB: loop body
LE: loop exit
PB: predicated region body
PF: predicated region fallthrough
CT: control target
= control target key end

     0   :  { %9 = vsyncpa [#allocation4], 0  ;;  %s589_s0 = inlined_call_operand.hbm [shape: f32[8,32], index: 0, kind: input, shape index: {}, may-alias: {0,2}]   ;;  %s590_s1 = inlined_call_operand.hbm [shape: f32[8,32], index: 1, kind: input, shape index: {}, may-alias: {1,3}]   ;;  %s591_s2 = inlined_call_operand.hbm [shape: f32[8,32], index: 2, kind: input, shape index: {}, may-alias: {0,2}]   ;;  %s592_s3 = inlined_call_operand.hbm [shape: f32[8,32], index: 3, kind: input, shape index: {}, may-alias: {1,3}]   ;;  %s593_s4 = inlined_call_operand.vmem [shape: f32[2], index: 4, kind: output, shape index: {}]  }
   0x1   :  { %10 = vsyncpa [#allocation7], 0 }
   0x2   :  { %11 = vsyncpa [#allocation10], 0 }
   0x3   :  { %12 = vsyncpa [#allocation5], 0  ;;  %s532_s15 = smov [#allocation6]   ;;  %s533_s17 = smov [#allocation3]  }
   0x4   :  { %s29_s16 = sshll.u32 %s532_s15, 4  ;;  %s19_s18 = sshll.u32 %s533_s17, 4  ;;  %s30_s16 = int_to_ptr.vmem [resolvable:$true] %s29_s16  ;;  %s20_s18 = int_to_ptr.vmem [resolvable:$true] %s19_s18 }
   0x5   :  { %s440_s19 = scalar_lea.vmem %s30_s16, 128  ;;  %p445_p1 = scmp.lt.s32.totalorder %s30_s16, %s30_s16 }
   0x6   :  { %p441_p0 = scmp.ne.s32.totalorder %s30_s16, %s440_s19  ;;  %p446_p2 = scmp.lt.s32.totalorder %s440_s19, %s440_s19 }
   0x8   :  { %p447_p3 = por %p446_p2, %p445_p1 }
   0xa   :  { %p448_p4 = pnand %p447_p3, %p441_p0 }
   0xc   :  { %451 = shalt.err (!%p448_p4)
}
   0xd   :  { %32 = dma.hbm_to_vmem [thread:$0]  %s590_s1, 128, %s30_s16, [#allocation7]  }
   0xe   :  { %s460_s22 = scalar_lea.vmem %s20_s18, 128  ;;  %p465_p6 = scmp.lt.s32.totalorder %s20_s18, %s20_s18 }
   0xf   :  { %p461_p5 = scmp.ne.s32.totalorder %s20_s18, %s460_s22  ;;  %p466_p7 = scmp.lt.s32.totalorder %s460_s22, %s460_s22 }
  0x11   :  { %p467_p8 = por %p466_p7, %p465_p6 }
  0x13   :  { %p468_p9 = pnand %p467_p8, %p461_p5 }
  0x15   :  { %471 = shalt.err (!%p468_p9)
}
  0x16   :  { %22 = dma.hbm_to_vmem [thread:$0]  %s589_s0, 128, %s20_s18, [#allocation4]  }
  0x17   :  { %s534_s25 = smov [#allocation8]   ;;  %s535_s27 = smov [#allocation9]  }
  0x18   :  { %s39_s26 = sshll.u32 %s534_s25, 4  ;;  %s49_s28 = sshll.u32 %s535_s27, 4  ;;  %s40_s26 = int_to_ptr.vmem [resolvable:$true] %s39_s26  ;;  %s50_s28 = int_to_ptr.vmem [resolvable:$true] %s49_s28 }
  0x19   :  { %s480_s29 = scalar_lea.vmem %s40_s26, 128  ;;  %p485_p11 = scmp.lt.s32.totalorder %s40_s26, %s40_s26 }
  0x1a   :  { %p481_p10 = scmp.ne.s32.totalorder %s40_s26, %s480_s29  ;;  %p486_p12 = scmp.lt.s32.totalorder %s480_s29, %s480_s29 }
  0x1c   :  { %p487_p13 = por %p486_p12, %p485_p11 }
  0x1e   :  { %p488_p0 = pnand %p487_p13, %p481_p10 }
  0x20   :  { %491 = shalt.err (!%p488_p0)
}
  0x21   :  { %42 = dma.hbm_to_vmem [thread:$0]  %s591_s2, 128, %s40_s26, [#allocation7]  }
  0x22   :  { %s500_s5 = scalar_lea.vmem %s50_s28, 128  ;;  %p505_p2 = scmp.lt.s32.totalorder %s50_s28, %s50_s28 }
  0x23   :  { %p501_p1 = scmp.ne.s32.totalorder %s50_s28, %s500_s5  ;;  %p506_p3 = scmp.lt.s32.totalorder %s500_s5, %s500_s5 }
  0x25   :  { %p507_p4 = por %p506_p3, %p505_p2 }
  0x27   :  { %p508_p5 = pnand %p507_p4, %p501_p1 }
  0x29   :  { %511 = shalt.err (!%p508_p5)
}
  0x2a   :  { %52 = dma.hbm_to_vmem [thread:$0]  %s592_s3, 128, %s50_s28, [#allocation10]  }
  0x2b   :  { %524 = dma.done.wait [#allocation4], 128  }
  0x2c   :  { %525 = vsyncadd [#allocation4], 4294967168 }
  0x2d   :  { %526 = dma.done.wait [#allocation7], 256  }
  0x2e   :  { %527 = vsyncadd [#allocation7], 4294967040 }
  0x2f   :  { %528 = dma.done.wait [#allocation10], 128  }
  0x30   :  { %529 = vsyncadd [#allocation10], 4294967168  ;;  %v536_v0 = vmov 0.0   ;;  %vm537_vm0 = vmmov 0   ;;  %vm83_vm1 = vcmask 261120   ;;  %v81_v1 = vld [vmem:[#allocation8] sm:$0xff]  ;;  %v269_v16 = vlaneseq }
  0x31   :  { %404 = vmatprep.subr.mxu1 %v536_v0  ;;  %406 = vmatprep.mubr.msk.f32.mxu1 %vm537_vm0, %v536_v0  ;;  %v79_v2 = vld [vmem:[#allocation3] sm:$0xff]  ;;  %v82_v3 = vld [vmem:[#allocation9] sm:$0xff]  ;;  %v80_v5 = vld [vmem:[#allocation6] sm:$0xff]  ;;  %vm253_vm2 = vcmask 64512   ;;  %vm334_vm3 = vcmask 7168   ;;  %s370_s14 = sshll.u32 %s593_s4, 4  ;;  %s371_s14 = int_to_ptr.vmem [resolvable:$true] %s370_s14 }
  0x32   :  { %399 = vmatprep.subr.mxu0 %v536_v0  ;;  %401 = vmatprep.mubr.msk.f32.mxu0 %vm537_vm0, %v536_v0  ;;  %v321_v4 = vmul.f32 %v79_v2, %v79_v2  ;;  %v237_v6 = vmul.f32 %v82_v3, %v81_v1  ;;  %v233_v7 = vmul.f32 %v80_v5, %v79_v2  ;;  %v270_v17 = vand.u32 127, %v269_v16  ;;  %s512_s18 = scalar_lea.vmem %s371_s14, 16  ;;  %p517_p7 = scmp.lt.s32.totalorder %s371_s14, %s371_s14 }
  0x33   :  { %405 = vmatpush3.xpose.msk.msra.mxu1 %vm83_vm1, %v81_v1  ;;  %400 = vmatpush3.xpose.msk.msra.mxu0 %vm83_vm1, %v82_v3  ;;  %v272_v18 = vshrl.u32 %v269_v16, 7  ;;  %p513_p6 = scmp.ne.s32.totalorder %s371_s14, %s512_s18  ;;  %p518_p8 = scmp.lt.s32.totalorder %s512_s18, %s512_s18 }
  0x34   :  { %v322_v8 = vsel %vm83_vm1, %v321_v4, 0.0  ;;  %v234_v9 = vsel %vm83_vm1, %v233_v7, 0.0  ;;  %v238_v10 = vsel %vm83_vm1, %v237_v6, 0.0 }
  0x35   :  { %323 = vadd.xlane.f32.xlu0 %v322_v8  ;;  %235 = vadd.xlane.f32.xlu1 %v234_v9  ;;  %v273_v19 = vsub.s32 %v270_v17, %v272_v18  ;;  %p519_p9 = por %p518_p8, %p517_p7 }
  0x36   :  { %407 = vmatmul.mubr.msk.f32.vlgmr.msra.gmra.mxu1 %vm83_vm1, %v79_v2  ;;  %402 = vmatmul.mubr.msk.f32.vlgmr.msra.gmra.mxu0 %vm83_vm1, %v79_v2 }
  0x37   :  { %p520_p10 = pnand %p519_p9, %p513_p6 }
  0x39   :  { %239 = vadd.xlane.f32.xlu0 %v238_v10 }
  0xbe   :  { %v324_v11 = vpop.xlane.xlu0 %323  ;;  %v236_v37 = vpop.xlane.xlu1 %235 }
  0xbf   :  { %v326_v12 = vsub.f32 0.0, %v324_v11 }
  0xc1   :  { %v390_v13 = vmul.f32 -1.442695, %v326_v12 }
  0xc2   :  { %v240_v20 = vpop.xlane.xlu0 %239 }
  0xc3   :  { %424 = vpow2.f32 %v390_v13  ;;  %v274_v21 = vrot.slane %v240_v20, %v273_v19 }
  0xd0   :  { %v425_v14 = vpop.eup %424 }
  0xd1   :  { %v330_v15 = vadd.f32 1.0, %v425_v14 }
  0xd3   :  { %426 = vrcp.f32 %v330_v15 }
  0xe0   :  { %v427_v26 = vpop.eup %426 }
  0xe1   :  { %v333_v32 = vmul.f32 0.2, %v427_v26 }
  0xe3   :  { %v335_v34 = vsel %vm334_vm3, %v333_v32, 0.0 }
  0xf6   :  { %v229_v22 = vpop.f32.mrf.mxu1  ;;  %v156_v23 = vpop.f32.mrf.mxu0 }
  0xf7   :  { %v241_v24 = vsub.f32 0.0, %v229_v22  ;;  %v288_v25 = vsub.f32 %v156_v23, %v274_v21  ;;  %v250_v38 = vsub.f32 %v156_v23, %v236_v37 }
  0xf8   :  { %v408_v27 = vpop.f32.mrf.mxu1  ;;  %v403_v28 = vpop.f32.mrf.mxu0 }
  0xf9   :  { %v386_v29 = vmul.f32 -1.442695, %v241_v24  ;;  %v289_v30 = vadd.f32 0.2, %v288_v25 }
  0xfb   :  { %428 = vpow2.f32 %v386_v29  ;;  %v290_v31 = vmax.f32 %v289_v30, 0.0 }
  0xfd   :  { %v291_v33 = vsel %vm253_vm2, %v290_v31, 0.0 }
  0xfe   :  { %292 = vadd.xlane.f32.xlu0 %v291_v33 }
 0x102   :  { %336 = vadd.xlane.f32.xlu0 %v335_v34 }
 0x108   :  { %v429_v35 = vpop.eup %428 }
 0x109   :  { %v245_v36 = vadd.f32 1.0, %v429_v35 }
 0x10b   :  { %430 = vrcp.f32 %v245_v36 }
 0x118   :  { %v431_v39 = vpop.eup %430 }
 0x119   :  { %v248_v40 = vmul.f32 0.2, %v431_v39 }
 0x11b   :  { %v251_v41 = vadd.f32 %v250_v38, %v248_v40  ;;  %v305_v44 = vsel %vm253_vm2, %v248_v40, 0.0 }
 0x11d   :  { %v252_v42 = vmax.f32 %v251_v41, 0.0 }
 0x11f   :  { %v254_v43 = vsel %vm253_vm2, %v252_v42, 0.0 }
 0x120   :  { %255 = vadd.xlane.f32.xlu1 %v254_v43 }
 0x124   :  { %306 = vadd.xlane.f32.xlu1 %v305_v44 }
 0x187   :  { %v293_v45 = vpop.xlane.xlu0 %292 }
 0x188   :  { %v294_v46 = vrot.slane %v293_v45, 4 }
 0x18a   :  { %v295_v48 = vadd.f32 %v294_v46, %v293_v45 }
 0x18b   :  { %v337_v47 = vpop.xlane.xlu0 %336 }
 0x18c   :  { %v338_v49 = vrot.slane %v337_v47, 4  ;;  %v296_v50 = vrot.slane %v295_v48, 2 }
 0x18e   :  { %v339_v51 = vadd.f32 %v338_v49, %v337_v47  ;;  %v297_v57 = vadd.f32 %v296_v50, %v295_v48 }
 0x190   :  { %v340_v55 = vrot.slane %v339_v51, 2  ;;  %v298_v63 = vrot.slane %v297_v57, 1 }
 0x192   :  { %v341_v62 = vadd.f32 %v340_v55, %v339_v51  ;;  %v299_v4 = vadd.f32 %v298_v63, %v297_v57 }
 0x194   :  { %v342_v5 = vrot.slane %v341_v62, 1 }
 0x196   :  { %v343_v8 = vadd.f32 %v342_v5, %v341_v62 }
 0x1a9   :  { %v256_v52 = vpop.xlane.xlu1 %255 }
 0x1aa   :  { %v257_v53 = vrot.slane %v256_v52, 4 }
 0x1ac   :  { %v258_v54 = vadd.f32 %v257_v53, %v256_v52 }
 0x1ad   :  { %v307_v56 = vpop.xlane.xlu1 %306 }
 0x1ae   :  { %v259_v58 = vrot.slane %v258_v54, 2  ;;  %v308_v59 = vrot.slane %v307_v56, 4 }
 0x1b0   :  { %v309_v60 = vadd.f32 %v308_v59, %v307_v56  ;;  %v260_v61 = vadd.f32 %v259_v58, %v258_v54 }
 0x1b2   :  { %v310_v0 = vrot.slane %v309_v60, 2  ;;  %v261_v1 = vrot.slane %v260_v61, 1 }
 0x1b4   :  { %v311_v2 = vadd.f32 %v310_v0, %v309_v60  ;;  %v262_v3 = vadd.f32 %v261_v1, %v260_v61 }
 0x1b6   :  { %409 = vpush %v262_v3  ;;  %v312_v6 = vrot.slane %v311_v2, 1 }
 0x1b7   :  { %411 = vpush %v299_v4 }
 0x1b8   :  { %v313_v7 = vadd.f32 %v312_v6, %v311_v2 }
 0x1ba   :  { %413 = vpush %v313_v7 }
 0x1bb   :  { %415 = vpush %v343_v8 }
 0x1e7   :  { %s410_s2 = spop %409 }
 0x1e8   :  { %s412_s3 = spop %411 }
 0x1e9   :  { %s393_s8 = sadd.f32 -1.6, %s412_s3 }
 0x1eb   :  { %s414_s7 = spop %413 }
 0x1ec   :  { %s416_s9 = spop %415 }
 0x1ed   :  { %s352_s10 = ssub.f32 %s410_s2, %s416_s9 }
 0x1ee   :  { %s356_s11 = ssub.f32 %s414_s7, %s416_s9 }
 0x1ef   :  { %s357_s15 = sadd.f32 %s393_s8, %s352_s10 }
 0x1f0   :  { %s361_s16 = smul.f32 0.017857144, %s356_s11 }
 0x1f1   :  { %s358_s17 = smul.f32 0.017857144, %s357_s15 }
 0x1f2   :  { %363 = sst [smem:[#allocation11 + $0x1]] %s361_s16 }
 0x1f3   :  { %360 = sst [smem:[#allocation11]] %s358_s17 }
 0x1f4   :  { %523 = shalt.err (!%p520_p10)
}
 0x1f5   :  { %s538_s19 = smov [#allocation11]  }
 0x1f6   :  { %373 = dma.smem_to_vmem %s538_s19, 16, %s371_s14, [#allocation5]  }
 0x1f7   :  { %530 = dma.done.wait [#allocation5], 16  }
 0x1f8   :  { %531 = vsyncadd [#allocation5], 4294967280 }
 0x1f9   :  { %377 = sfence }
 0x1fa   :  { %378 = vsyncpa [#allocation4], 1 }
 0x1fb   :  { %379 = vsyncpa [#allocation7], 1 }
 0x1fc   :  { %380 = vsyncpa [#allocation10], 1 }
 0x1fd   :  { %381 = vsyncpa [#allocation5], 1 }

</bundles_post_ra>
